<compile_context>
chip_gen: v7x
topology: tpu7x:2x2x1
jax: 0.10.0
libtpu: 0.0.40
codegen_flags: <defaults>
</compile_context>

<pallas_src>
import functools

import jax
import jax.numpy as jnp
from jax.experimental import pallas as pl
from jax.experimental.pallas import tpu as pltpu


def _round_up(x, m):
    return (x + m - 1) // m * m


def _cdiv(a, b):
    return (a + b - 1) // b


def _vmem_capacity_bytes():
    """Physical per-core VMEM (64 MiB v7x, 128 MiB v5e/v6e); conservative fallback."""
    try:
        info = pltpu.get_tpu_info()
        cap = getattr(info, "vmem_capacity_bytes", None)
        if cap:
            return int(cap)
    except Exception:
        pass
    return 64 * 1024 * 1024  # conservative (v7x-sized) default


def mlp_kernel(x_ref, w1_ref, b1_ref, w2_ref, w3_ref, o_ref):
    # Hot path: 3 chained MXU matmuls + bias + ReLU on the current batch tile.
    # All accumulation in f32 regardless of the storage/compute dtype.
    cdt = w1_ref.dtype
    x = x_ref[...]
    h1 = jnp.dot(x, w1_ref[...], preferred_element_type=jnp.float32)
    h1 = jnp.maximum(h1 + b1_ref[...], 0.0)          # ReLU1 (Dropout1 = identity, eval)
    h2 = jnp.dot(h1.astype(cdt), w2_ref[...], preferred_element_type=jnp.float32)
    h2 = jnp.maximum(h2, 0.0)                        # ReLU2 (Dropout2 = identity, eval)
    o_ref[...] = jnp.dot(h2.astype(cdt), w3_ref[...],
                         preferred_element_type=jnp.float32).astype(o_ref.dtype)


def prepare_params(w1, b1, w2, w3, compute_dtype=jnp.float32):
    """Pad + cast weights ONCE (outside the per-call hot path).

    Zero padding is exact for this Linear/ReLU stack: padded weight rows/cols and
    padded bias entries are zero, so padded hidden features are relu(0)=0 and never
    contaminate real outputs.
    w1: (N, N); b1: (1, N); w2: (N, N); w3: (N, C), all stored as (in, out).
    """
    N = w1.shape[0]
    C = w3.shape[1]
    N_pad = _round_up(N, 128)
    C_pad = _round_up(C, 128)
    w1_p = jnp.zeros((N_pad, N_pad), compute_dtype).at[:N, :N].set(w1.astype(compute_dtype))
    b1_p = jnp.zeros((1, N_pad), jnp.float32).at[:, :N].set(b1.astype(jnp.float32))
    w2_p = jnp.zeros((N_pad, N_pad), compute_dtype).at[:N, :N].set(w2.astype(compute_dtype))
    w3_p = jnp.zeros((N_pad, C_pad), compute_dtype).at[:N, :C].set(w3.astype(compute_dtype))
    return w1_p, b1_p, w2_p, w3_p


@functools.partial(jax.jit,
                   static_argnames=("num_classes", "compute_dtype", "max_tile_b"))
def mlp_forward(x, w1_p, b1_p, w2_p, w3_p, *, num_classes,
                compute_dtype=jnp.float32, max_tile_b=512):
    """x: (B, N) f32; padded params from prepare_params. Returns (B, num_classes) f32."""
    B, N = x.shape
    N_pad = w1_p.shape[0]
    C_pad = w3_p.shape[1]
    C = num_classes

    itemsize = jnp.dtype(compute_dtype).itemsize
    sub = 16 if jnp.dtype(compute_dtype) == jnp.dtype(jnp.bfloat16) else 8

    # --- VMEM budget (generation-dependent). ---
    vmem_cap = _vmem_capacity_bytes()
    budget = int(0.75 * vmem_cap)                       # ~48 MiB v7x / ~96 MiB v5e,v6e
    vmem_limit = min(vmem_cap, budget + (8 << 20))

    def vmem_estimate(tb):
        # Weights/bias: constant index + Buffered(1) -> single-buffered, counted once.
        w_bytes = (2 * N_pad * N_pad + N_pad * C_pad) * itemsize + 8 * N_pad * 4
        # x / out blocks: default 2-deep pipeline buffers.
        io_bytes = 2 * (tb * N_pad * itemsize + tb * C_pad * 4)
        # f32 intermediates h1/h2 materialized in the body (+ compute-dtype recasts).
        act_bytes = 2 * tb * N_pad * (4 + itemsize)
        return w_bytes + io_bytes + act_bytes

    # --- Guard: resident weights must fit even at the smallest batch tile. ---
    if vmem_estimate(sub) > budget:
        # TODO(synk): K/N-tiled fallback (grid over hidden/contraction dims with a VMEM
        # f32 accumulator) for N too large for weight-resident tiling.
        raise ValueError(
            f"MLP weights do not fit the VMEM budget ({budget} bytes) even at the "
            f"smallest batch tile; a K/N-tiled fallback is not implemented.")

    # --- Batch tile selection: sublane-aligned, >=128 rows preferred. ---
    tile_b = min(max_tile_b, _round_up(B, sub))
    tile_b = max(sub, _round_up(tile_b, sub))
    while tile_b > 128 and vmem_estimate(tile_b) > budget:
        tile_b = max(128, _round_up(tile_b // 2, sub))
    while tile_b > sub and vmem_estimate(tile_b) > budget:
        tile_b = max(sub, _round_up(tile_b // 2, sub))

    # Prefer >= 2 grid steps (dual-TC sharding on v7x) when each half-tile still has
    # >= 128 rows; neutral on single-TC v5e/v6e.
    half = _round_up(_cdiv(_round_up(B, sub), 2), sub)
    if half >= 128:
        tile_b = min(tile_b, half)

    B_pad = _round_up(B, tile_b)
    num_tiles = B_pad // tile_b

    # --- Per-call padding of x only (weights were padded once at init). ---
    x_p = jnp.zeros((B_pad, N_pad), compute_dtype).at[:B, :N].set(x.astype(compute_dtype))

    flops = 2 * B_pad * (N_pad * N_pad + N_pad * N_pad + N_pad * C_pad)
    bytes_accessed = (x_p.size * itemsize
                      + (w1_p.size + w2_p.size + w3_p.size) * itemsize
                      + b1_p.size * 4
                      + B_pad * C_pad * 4)

    out_pad = pl.pallas_call(
        mlp_kernel,
        out_shape=jax.ShapeDtypeStruct((B_pad, C_pad), jnp.float32),
        grid=(num_tiles,),
        in_specs=[
            # x: batch-tiled, pipelined (default double-buffering).
            pl.BlockSpec((tile_b, N_pad), lambda i: (i, 0)),
            # Weights/bias: constant index -> VMEM-resident, single-buffered.
            pl.BlockSpec((N_pad, N_pad), lambda i: (0, 0),
                         pipeline_mode=pl.Buffered(1)),
            pl.BlockSpec((1, N_pad), lambda i: (0, 0),
                         pipeline_mode=pl.Buffered(1)),
            pl.BlockSpec((N_pad, N_pad), lambda i: (0, 0),
                         pipeline_mode=pl.Buffered(1)),
            pl.BlockSpec((N_pad, C_pad), lambda i: (0, 0),
                         pipeline_mode=pl.Buffered(1)),
        ],
        out_specs=pl.BlockSpec((tile_b, C_pad), lambda i: (i, 0)),  # lane-dense output
        compiler_params=pltpu.CompilerParams(
            dimension_semantics=("parallel",),            # dual-TC sharding on v7x
            vmem_limit_bytes=int(vmem_limit),
        ),
        cost_estimate=pl.CostEstimate(
            flops=flops, transcendentals=0, bytes_accessed=bytes_accessed),
    )(x_p, w1_p, b1_p, w2_p, w3_p)

    return out_pad[:B, :C]


def init_params(key, num_input, num_classes):
    """Deterministic init matching the module's init_weights (normal, std=0.01)
    for all Linear weights; linear1 bias uses PyTorch's default uniform init."""
    k1, k2, k3, kb = jax.random.split(key, 4)
    # PyTorch Linear stores weight as (out, in); we keep the transposed (in, out)
    # layout so the kernel can do x @ W directly. Normal(std=0.01) is symmetric,
    # so the distribution is identical either way.
    w1 = 0.01 * jax.random.normal(k1, (num_input, num_input), jnp.float32)
    w2 = 0.01 * jax.random.normal(k2, (num_input, num_input), jnp.float32)
    w3 = 0.01 * jax.random.normal(k3, (num_input, num_classes), jnp.float32)
    bound = 1.0 / jnp.sqrt(jnp.float32(num_input))
    b1 = jax.random.uniform(kb, (1, num_input), jnp.float32, -bound, bound)
    return w1, b1, w2, w3


def mlp_reference(x, w1, b1, w2, w3):
    h1 = jnp.maximum(x @ w1 + b1, 0.0)
    h2 = jnp.maximum(h1 @ w2, 0.0)
    return h2 @ w3


if __name__ == "__main__":
    key = jax.random.PRNGKey(0)
    kx, kp = jax.random.split(key)

    batch, num_input, num_classes = 8, 32, 16
    x = jax.random.normal(kx, (batch, num_input), jnp.float32)
    w1, b1, w2, w3 = init_params(kp, num_input, num_classes)

    ref = mlp_reference(x, w1, b1, w2, w3)

    # f32 storage/compute path: tight tolerance.
    params_f32 = prepare_params(w1, b1, w2, w3, jnp.float32)
    out = mlp_forward(x, *params_f32, num_classes=num_classes,
                      compute_dtype=jnp.float32)
    out = jax.block_until_ready(out)
    assert out.shape == (batch, num_classes)
    assert jnp.allclose(out, ref, atol=1e-5, rtol=1e-5)

    # bf16 storage/compute path (f32 MXU accumulation): looser tolerance, exercises
    # the v6e/v7x-preferred configuration.
    params_bf16 = prepare_params(w1, b1, w2, w3, jnp.bfloat16)
    out_bf16 = mlp_forward(x, *params_bf16, num_classes=num_classes,
                           compute_dtype=jnp.bfloat16)
    out_bf16 = jax.block_until_ready(out_bf16)
    assert out_bf16.shape == (batch, num_classes)
    assert jnp.allclose(out_bf16, ref, atol=2e-3, rtol=1e-1)

    print("KERNEL_OK")
</pallas_src>

<mosaic_0001>
module attributes {stable_mosaic.version = 11 : i64} {
  func.func @mlp_kernel(%arg0: i32, %arg1: memref<8x128xf32, #tpu.memory_space<vmem>>, %arg2: memref<128x128xf32, #tpu.memory_space<vmem>>, %arg3: memref<1x128xf32, #tpu.memory_space<vmem>>, %arg4: memref<128x128xf32, #tpu.memory_space<vmem>>, %arg5: memref<128x128xf32, #tpu.memory_space<vmem>>, %arg6: memref<8x128xf32, #tpu.memory_space<vmem>>) attributes {dimension_semantics = [#tpu.dimension_semantics<parallel>], iteration_bounds = array<i64: 1>, scalar_prefetch = 0 : i64, scratch_operands = 0 : i64, tpu.core_type = #tpu.core_type<tc>, window_params = [{transform_indices = @transform_0, window_bounds = array<i64: 8, 128>}, {pipeline_mode = #tpu.pipeline_mode<synchronous>, transform_indices = @transform_1, window_bounds = array<i64: 128, 128>}, {pipeline_mode = #tpu.pipeline_mode<synchronous>, transform_indices = @transform_2, window_bounds = array<i64: 1, 128>}, {pipeline_mode = #tpu.pipeline_mode<synchronous>, transform_indices = @transform_3, window_bounds = array<i64: 128, 128>}, {pipeline_mode = #tpu.pipeline_mode<synchronous>, transform_indices = @transform_4, window_bounds = array<i64: 128, 128>}, {transform_indices = @transform_5, window_bounds = array<i64: 8, 128>}]} {
    %c0 = arith.constant 0 : index
    %c0_0 = arith.constant 0 : index
    %0 = vector.load %arg1[%c0, %c0_0] : memref<8x128xf32, #tpu.memory_space<vmem>>, vector<8x128xf32>
    %c0_1 = arith.constant 0 : index
    %c0_2 = arith.constant 0 : index
    %1 = vector.load %arg2[%c0_1, %c0_2] : memref<128x128xf32, #tpu.memory_space<vmem>>, vector<128x128xf32>
    %cst = arith.constant dense<0.000000e+00> : vector<8x128xf32>
    %2 = tpu.matmul %0, %1, %cst {dimension_numbers = #tpu.dot_dimension_numbers<[1], [0], [0], [1], [0, 0, 1, 1], [], []>} : vector<8x128xf32>, vector<128x128xf32>, vector<8x128xf32> -> vector<8x128xf32>
    %c0_3 = arith.constant 0 : index
    %c0_4 = arith.constant 0 : index
    %3 = vector.load %arg3[%c0_3, %c0_4] : memref<1x128xf32, #tpu.memory_space<vmem>>, vector<1x128xf32>
    %4 = vector.broadcast %3 : vector<1x128xf32> to vector<8x128xf32>
    %5 = arith.addf %2, %4 : vector<8x128xf32>
    %cst_5 = arith.constant 0.000000e+00 : f32
    %6 = vector.broadcast %cst_5 : f32 to vector<8x128xf32>
    %7 = arith.maximumf %5, %6 : vector<8x128xf32>
    %c0_6 = arith.constant 0 : index
    %c0_7 = arith.constant 0 : index
    %8 = vector.load %arg4[%c0_6, %c0_7] : memref<128x128xf32, #tpu.memory_space<vmem>>, vector<128x128xf32>
    %cst_8 = arith.constant dense<0.000000e+00> : vector<8x128xf32>
    %9 = tpu.matmul %7, %8, %cst_8 {dimension_numbers = #tpu.dot_dimension_numbers<[1], [0], [0], [1], [0, 0, 1, 1], [], []>} : vector<8x128xf32>, vector<128x128xf32>, vector<8x128xf32> -> vector<8x128xf32>
    %cst_9 = arith.constant 0.000000e+00 : f32
    %10 = vector.broadcast %cst_9 : f32 to vector<8x128xf32>
    %11 = arith.maximumf %9, %10 : vector<8x128xf32>
    %c0_10 = arith.constant 0 : index
    %c0_11 = arith.constant 0 : index
    %12 = vector.load %arg5[%c0_10, %c0_11] : memref<128x128xf32, #tpu.memory_space<vmem>>, vector<128x128xf32>
    %cst_12 = arith.constant dense<0.000000e+00> : vector<8x128xf32>
    %13 = tpu.matmul %11, %12, %cst_12 {dimension_numbers = #tpu.dot_dimension_numbers<[1], [0], [0], [1], [0, 0, 1, 1], [], []>} : vector<8x128xf32>, vector<128x128xf32>, vector<8x128xf32> -> vector<8x128xf32>
    %c0_13 = arith.constant 0 : index
    %c0_14 = arith.constant 0 : index
    %14 = vector.load %arg6[%c0_13, %c0_14] : memref<8x128xf32, #tpu.memory_space<vmem>>, vector<8x128xf32>
    tpu.vector_store %arg6[%c0_13, %c0_14], %13 {strides = array<i32>} : memref<8x128xf32, #tpu.memory_space<vmem>>, vector<8x128xf32>,
    return
  }
  func.func @transform_0(%arg0: i32) -> (i32, i32) {
    %c0_i32 = arith.constant 0 : i32
    %c0_i32_0 = arith.constant 0 : i32
    return %arg0, %c0_i32 : i32, i32
  }
  func.func @transform_1(%arg0: i32) -> (i32, i32) {
    %c0_i32 = arith.constant 0 : i32
    %c0_i32_0 = arith.constant 0 : i32
    %c0_i32_1 = arith.constant 0 : i32
    return %c0_i32, %c0_i32_0 : i32, i32
  }
  func.func @transform_2(%arg0: i32) -> (i32, i32) {
    %c0_i32 = arith.constant 0 : i32
    %c0_i32_0 = arith.constant 0 : i32
    %c0_i32_1 = arith.constant 0 : i32
    return %c0_i32, %c0_i32_0 : i32, i32
  }
  func.func @transform_3(%arg0: i32) -> (i32, i32) {
    %c0_i32 = arith.constant 0 : i32
    %c0_i32_0 = arith.constant 0 : i32
    %c0_i32_1 = arith.constant 0 : i32
    return %c0_i32, %c0_i32_0 : i32, i32
  }
  func.func @transform_4(%arg0: i32) -> (i32, i32) {
    %c0_i32 = arith.constant 0 : i32
    %c0_i32_0 = arith.constant 0 : i32
    %c0_i32_1 = arith.constant 0 : i32
    return %c0_i32, %c0_i32_0 : i32, i32
  }
  func.func @transform_5(%arg0: i32) -> (i32, i32) {
    %c0_i32 = arith.constant 0 : i32
    %c0_i32_0 = arith.constant 0 : i32
    return %arg0, %c0_i32 : i32, i32
  }
}

</mosaic_0001>

<bundles_post_ra>
// kernel: mlp_forward.1
= control target key start
LH: loop header
LB: loop body
LE: loop exit
PB: predicated region body
PF: predicated region fallthrough
CT: control target
= control target key end

     0   :  { %10 = vsyncpa [#allocation3], 0  ;;  %s818_s0 = inlined_call_operand.vmem [shape: f32[8,128], index: 0, kind: input, shape index: {}]   ;;  %s819_s1 = inlined_call_operand.hbm [shape: f32[128,128], index: 1, kind: input, shape index: {}]   ;;  %s820_s2 = inlined_call_operand.vmem [shape: f32[1,128], index: 2, kind: input, shape index: {}]   ;;  %s821_s3 = inlined_call_operand.hbm [shape: f32[128,128], index: 3, kind: input, shape index: {}]   ;;  %s822_s4 = inlined_call_operand.hbm [shape: f32[128,128], index: 4, kind: input, shape index: {}]   ;;  %s823_s5 = inlined_call_operand.hbm [shape: f32[8,128], index: 5, kind: output, shape index: {}]  }
   0x1   :  { %11 = vsyncpa [#allocation6], 0 }
   0x2   :  { %12 = vsyncpa [#allocation4], 0  ;;  %s679_s18 = smov [#allocation5]   ;;  %s680_s20 = smov [#allocation2]  }
   0x3   :  { %s34_s19 = sshll.u32 %s679_s18, 4  ;;  %s20_s21 = sshll.u32 %s680_s20, 4  ;;  %s35_s19 = int_to_ptr.vmem [resolvable:$true] %s34_s19  ;;  %s718_s21 = int_to_ptr.vmem [resolvable:$true] %s20_s21 }
   0x4   :  { %s585_s24 = scalar_lea.hbm %s821_s3, 2048 }
   0x5   :  { %p586_p0 = scmp.ne.s32.totalorder %s821_s3, %s585_s24  ;;  %p589_p1 = scmp.lt.u32.totalorder %s585_s24, %s821_s3 }
   0x7   :  { %p591_p2 = pnand %p589_p1, %p586_p0 }
   0x9   :  { %594 = shalt.err (!%p591_p2)
}
   0xa   :  { %s595_s29 = scalar_lea.vmem %s35_s19, 2048  ;;  %p600_p4 = scmp.lt.s32.totalorder %s35_s19, %s35_s19 }
   0xb   :  { %p596_p3 = scmp.ne.s32.totalorder %s35_s19, %s595_s29  ;;  %p601_p5 = scmp.lt.s32.totalorder %s595_s29, %s595_s29 }
   0xd   :  { %p602_p6 = por %p601_p5, %p600_p4 }
   0xf   :  { %p603_p7 = pnand %p602_p6, %p596_p3 }
  0x11   :  { %606 = shalt.err (!%p603_p7)
}
  0x12   :  { %s681_s30 = smov 128   ;;  %s682_s6 = smov 8  }
  0x13   :  { %40 = dma.hbm_to_vmem [thread:$0]  %s821_s3, 2048, %s35_s19, [#allocation6], %s681_s30, %s681_s30, %s682_s6  }
  0x14   :  { %s607_s11 = scalar_lea.hbm %s819_s1, 2048 }
  0x15   :  { %p608_p8 = scmp.ne.s32.totalorder %s819_s1, %s607_s11  ;;  %p611_p9 = scmp.lt.u32.totalorder %s607_s11, %s819_s1 }
  0x17   :  { %p613_p10 = pnand %p611_p9, %p608_p8 }
  0x19   :  { %616 = shalt.err (!%p613_p10)
}
  0x1a   :  { %s617_s16 = scalar_lea.vmem %s718_s21, 2048  ;;  %p622_p12 = scmp.lt.s32.totalorder %s718_s21, %s718_s21 }
  0x1b   :  { %p618_p11 = scmp.ne.s32.totalorder %s718_s21, %s617_s16  ;;  %p623_p13 = scmp.lt.s32.totalorder %s617_s16, %s617_s16 }
  0x1d   :  { %p624_p0 = por %p623_p13, %p622_p12 }
  0x1f   :  { %p625_p1 = pnand %p624_p0, %p618_p11 }
  0x21   :  { %628 = shalt.err (!%p625_p1)
}
  0x22   :  { %26 = dma.hbm_to_vmem [thread:$0]  %s819_s1, 2048, %s718_s21, [#allocation3], %s681_s30, %s681_s30, %s682_s6  }
  0x23   :  { %s683_s18 = smov [#allocation7]   ;;  %s629_s23 = scalar_lea.hbm %s822_s4, 2048 }
  0x24   :  { %s46_s19 = sshll.u32 %s683_s18, 4  ;;  %p630_p2 = scmp.ne.s32.totalorder %s822_s4, %s629_s23  ;;  %s47_s19 = int_to_ptr.vmem [resolvable:$true] %s46_s19 }
  0x25   :  { %p633_p3 = scmp.lt.u32.totalorder %s629_s23, %s822_s4 }
  0x27   :  { %p635_p4 = pnand %p633_p3, %p630_p2 }
  0x29   :  { %638 = shalt.err (!%p635_p4)
}
  0x2a   :  { %s639_s28 = scalar_lea.vmem %s47_s19, 2048  ;;  %p644_p6 = scmp.lt.s32.totalorder %s47_s19, %s47_s19 }
  0x2b   :  { %p640_p5 = scmp.ne.s32.totalorder %s47_s19, %s639_s28  ;;  %p645_p7 = scmp.lt.s32.totalorder %s639_s28, %s639_s28 }
  0x2d   :  { %p646_p8 = por %p645_p7, %p644_p6 }
  0x2f   :  { %p647_p9 = pnand %p646_p8, %p640_p5 }
  0x31   :  { %650 = shalt.err (!%p647_p9)
}
  0x32   :  { %52 = dma.hbm_to_vmem [thread:$0]  %s822_s4, 2048, %s47_s19, [#allocation6], %s681_s30, %s681_s30, %s682_s6  }
  0x33   :  { %673 = dma.done.wait [#allocation3], 2048  }
  0x34   :  { %674 = vsyncadd [#allocation3], 4294965248 }
  0x35   :  { %675 = dma.done.wait [#allocation6], 4096  }
  0x36   :  { %676 = vsyncadd [#allocation6], 4294963200  ;;  %v684_v0 = vmov 0.0|0.0   ;;  %vm685_vm0 = vmmov 0   ;;  %v686_v1 = vmov 0.0   ;;  %v63_v2 = vld [vmem:[#allocation2] sm:$0xff] }
  0x37   :  { %504 = vmatprep.subr.bf16.mxu0 %v684_v0  ;;  %431 = vmatprep.mubr.msk.f32.mxu0 %vm685_vm0, %v686_v1  ;;  %v64_v3 = vld [vmem:[#allocation2 + $0x8] sm:$0xff]  ;;  %v65_v4 = vld [vmem:[#allocation2 + $0x10] sm:$0xff]  ;;  %v66_v6 = vld [vmem:[#allocation2 + $0x18] sm:$0xff]  ;;  %s687_s6 = smov [#allocation8]  }
  0x38   :  { %528 = vmatprep.subr.bf16.mxu1 %v684_v0  ;;  %466 = vmatprep.mubr.msk.f32.mxu1 %vm685_vm0, %v686_v1  ;;  %v505_v5 = vpack.c.bf16 %v64_v3, %v63_v2  ;;  %v508_v7 = vpack.c.bf16 %v66_v6, %v65_v4  ;;  %v67_v8 = vld [vmem:[#allocation2 + $0x20] sm:$0xff]  ;;  %v68_v9 = vld [vmem:[#allocation2 + $0x28] sm:$0xff]  ;;  %v159_v12 = vld [vmem:[#allocation5 + $0x10] sm:$0xff]  ;;  %s337_s7 = sshll.u32 %s687_s6, 4  ;;  %s338_s7 = int_to_ptr.vmem [resolvable:$true] %s337_s7 }
  0x39   :  { %v157_v10 = vld [vmem:[#allocation5] sm:$0xff]  ;;  %v158_v11 = vld [vmem:[#allocation5 + $0x8] sm:$0xff]  ;;  %v160_v13 = vld [vmem:[#allocation5 + $0x18] sm:$0xff]  ;;  %v511_v14 = vpack.c.bf16 %v68_v9, %v67_v8  ;;  %p656_p11 = scmp.lt.s32.totalorder %s338_s7, %s338_s7 }
  0x3a   :  { %506 = vmatpush3.bf16.msra.mxu0 %v505_v5  ;;  %v529_v15 = vpack.c.bf16 %v158_v11, %v157_v10  ;;  %v69_v16 = vld [vmem:[#allocation2 + $0x30] sm:$0xff]  ;;  %v70_v17 = vld [vmem:[#allocation2 + $0x38] sm:$0xff]  ;;  %v532_v18 = vpack.c.bf16 %v160_v13, %v159_v12  ;;  %v161_v19 = vld [vmem:[#allocation5 + $0x20] sm:$0xff] }
  0x3b   :  { %507 = vmatprep.subr.bf16.mxu0 %v684_v0  ;;  %v162_v20 = vld [vmem:[#allocation5 + $0x28] sm:$0xff]  ;;  %v514_v21 = vpack.c.bf16 %v70_v17, %v69_v16  ;;  %v71_v22 = vld [vmem:[#allocation2 + $0x40] sm:$0xff]  ;;  %v163_v25 = vld [vmem:[#allocation5 + $0x30] sm:$0xff] }
  0x3c   :  { %530 = vmatpush3.bf16.msra.mxu1 %v529_v15  ;;  %v72_v23 = vld [vmem:[#allocation2 + $0x48] sm:$0xff]  ;;  %v535_v24 = vpack.c.bf16 %v162_v20, %v161_v19  ;;  %v164_v26 = vld [vmem:[#allocation5 + $0x38] sm:$0xff]  ;;  %v73_v28 = vld [vmem:[#allocation2 + $0x50] sm:$0xff] }
  0x3d   :  { %531 = vmatprep.subr.bf16.mxu1 %v684_v0  ;;  %v517_v27 = vpack.c.bf16 %v72_v23, %v71_v22  ;;  %v74_v29 = vld [vmem:[#allocation2 + $0x58] sm:$0xff]  ;;  %v538_v30 = vpack.c.bf16 %v164_v26, %v163_v25  ;;  %v165_v31 = vld [vmem:[#allocation5 + $0x40] sm:$0xff]  ;;  %v166_v32 = vld [vmem:[#allocation5 + $0x48] sm:$0xff] }
  0x3e   :  { %509 = vmatpush3.bf16.msra.mxu0 %v508_v7  ;;  %v520_v33 = vpack.c.bf16 %v74_v29, %v73_v28  ;;  %v75_v34 = vld [vmem:[#allocation2 + $0x60] sm:$0xff]  ;;  %v76_v35 = vld [vmem:[#allocation2 + $0x68] sm:$0xff]  ;;  %v541_v36 = vpack.c.bf16 %v166_v32, %v165_v31  ;;  %v167_v37 = vld [vmem:[#allocation5 + $0x50] sm:$0xff] }
  0x3f   :  { %510 = vmatprep.subr.bf16.mxu0 %v684_v0  ;;  %v168_v38 = vld [vmem:[#allocation5 + $0x58] sm:$0xff]  ;;  %v523_v39 = vpack.c.bf16 %v76_v35, %v75_v34  ;;  %v77_v40 = vld [vmem:[#allocation2 + $0x70] sm:$0xff]  ;;  %v169_v43 = vld [vmem:[#allocation5 + $0x60] sm:$0xff] }
  0x40   :  { %533 = vmatpush3.bf16.msra.mxu1 %v532_v18  ;;  %v78_v41 = vld [vmem:[#allocation2 + $0x78] sm:$0xff]  ;;  %v544_v42 = vpack.c.bf16 %v168_v38, %v167_v37  ;;  %v170_v44 = vld [vmem:[#allocation5 + $0x68] sm:$0xff]  ;;  %v62_v47 = vld [vmem:[%s818_s0] sm:$0xff] }
  0x41   :  { %534 = vmatprep.subr.bf16.mxu1 %v684_v0  ;;  %v526_v45 = vpack.c.bf16 %v78_v41, %v77_v40  ;;  %v547_v46 = vpack.c.bf16 %v170_v44, %v169_v43  ;;  %v171_v48 = vld [vmem:[#allocation5 + $0x70] sm:$0xff]  ;;  %v172_v49 = vld [vmem:[#allocation5 + $0x78] sm:$0xff]  ;;  %v244_v51 = vld [vmem:[#allocation7] sm:$0xff] }
  0x42   :  { %512 = vmatpush3.bf16.msra.mxu0 %v511_v14  ;;  %v550_v50 = vpack.c.bf16 %v172_v49, %v171_v48  ;;  %v245_v52 = vld [vmem:[#allocation7 + $0x8] sm:$0xff]  ;;  %v246_v53 = vld [vmem:[#allocation7 + $0x10] sm:$0xff]  ;;  %v247_v55 = vld [vmem:[#allocation7 + $0x18] sm:$0xff] }
  0x43   :  { %513 = vmatprep.subr.bf16.mxu0 %v684_v0  ;;  %v553_v54 = vpack.c.bf16 %v245_v52, %v244_v51  ;;  %v556_v56 = vpack.c.bf16 %v247_v55, %v246_v53  ;;  %v248_v57 = vld [vmem:[#allocation7 + $0x20] sm:$0xff]  ;;  %v249_v58 = vld [vmem:[#allocation7 + $0x28] sm:$0xff]  ;;  %v250_v60 = vld [vmem:[#allocation7 + $0x30] sm:$0xff] }
  0x44   :  { %536 = vmatpush3.bf16.msra.mxu1 %v535_v24  ;;  %v559_v59 = vpack.c.bf16 %v249_v58, %v248_v57  ;;  %v251_v61 = vld [vmem:[#allocation7 + $0x38] sm:$0xff]  ;;  %v252_v63 = vld [vmem:[#allocation7 + $0x40] sm:$0xff]  ;;  %v254_v3 = vld [vmem:[#allocation7 + $0x50] sm:$0xff] }
  0x45   :  { %537 = vmatprep.subr.bf16.mxu1 %v684_v0  ;;  %v562_v62 = vpack.c.bf16 %v251_v61, %v250_v60  ;;  %v255_v4 = vld [vmem:[#allocation7 + $0x58] sm:$0xff]  ;;  %v256_v6 = vld [vmem:[#allocation7 + $0x60] sm:$0xff]  ;;  %v257_v7 = vld [vmem:[#allocation7 + $0x68] sm:$0xff] }
  0x46   :  { %515 = vmatpush3.bf16.msra.mxu0 %v514_v21  ;;  %v568_v5 = vpack.c.bf16 %v255_v4, %v254_v3  ;;  %v571_v8 = vpack.c.bf16 %v257_v7, %v256_v6  ;;  %v347_v9 = vld [vmem:[%s820_s2] ss:$0 sm:$0xff]  ;;  %v258_v14 = vld [vmem:[#allocation7 + $0x70] sm:$0xff]  ;;  %v259_v15 = vld [vmem:[#allocation7 + $0x78] sm:$0xff]  ;;  %s651_s2 = scalar_lea.vmem %s338_s7, 128 }
  0x47   :  { %516 = vmatprep.subr.bf16.mxu0 %v684_v0  ;;  %v574_v16 = vpack.c.bf16 %v259_v15, %v258_v14  ;;  %p652_p10 = scmp.ne.s32.totalorder %s338_s7, %s651_s2  ;;  %p657_p12 = scmp.lt.s32.totalorder %s651_s2, %s651_s2 }
  0x48   :  { %539 = vmatpush3.bf16.msra.mxu1 %v538_v30 }
  0x49   :  { %540 = vmatprep.subr.bf16.mxu1 %v684_v0  ;;  %p658_p13 = por %p657_p12, %p656_p11 }
  0x4a   :  { %518 = vmatpush3.bf16.msra.mxu0 %v517_v27 }
  0x4b   :  { %519 = vmatprep.subr.bf16.mxu0 %v684_v0  ;;  %p659_p0 = pnand %p658_p13, %p652_p10 }
  0x4c   :  { %542 = vmatpush3.bf16.msra.mxu1 %v541_v36 }
  0x4d   :  { %543 = vmatprep.subr.bf16.mxu1 %v684_v0 }
  0x4e   :  { %521 = vmatpush3.bf16.msra.mxu0 %v520_v33 }
  0x4f   :  { %522 = vmatprep.subr.bf16.mxu0 %v684_v0 }
  0x50   :  { %545 = vmatpush3.bf16.msra.mxu1 %v544_v42 }
  0x51   :  { %546 = vmatprep.subr.bf16.mxu1 %v684_v0 }
  0x52   :  { %524 = vmatpush3.bf16.msra.mxu0 %v523_v39 }
  0x53   :  { %525 = vmatprep.subr.bf16.mxu0 %v684_v0 }
  0x54   :  { %548 = vmatpush3.bf16.msra.mxu1 %v547_v46 }
  0x55   :  { %549 = vmatprep.subr.bf16.mxu1 %v684_v0 }
  0x56   :  { %527 = vmatpush3.bf16.msra.mxu0 %v526_v45 }
  0x57   :  { %552 = vmatprep.subr.bf16.mxu0 %v684_v0 }
  0x58   :  { %551 = vmatpush3.bf16.msra.mxu1 %v550_v50 }
  0x59   :  { %432 = vmatmul.mubr.f32.vlgmr.msra.gmra.mrb[0].mxu0 %v62_v47 }
  0x5a   :  { %501 = vmatprep.mubr.msk.f32.mxu0 %vm685_vm0, %v686_v1  ;;  %554 = vmatpush3.bf16.msra.mxu0 %v553_v54  ;;  %v253_v1 = vld [vmem:[#allocation7 + $0x48] sm:$0xff] }
  0x5b   :  { %555 = vmatprep.subr.bf16.mxu0 %v684_v0  ;;  %v565_v2 = vpack.c.bf16 %v253_v1, %v252_v63 }
  0x5e   :  { %557 = vmatpush3.bf16.msra.mxu0 %v556_v56 }
  0x5f   :  { %558 = vmatprep.subr.bf16.mxu0 %v684_v0 }
  0x62   :  { %560 = vmatpush3.bf16.msra.mxu0 %v559_v59 }
  0x63   :  { %561 = vmatprep.subr.bf16.mxu0 %v684_v0 }
  0x66   :  { %563 = vmatpush3.bf16.msra.mxu0 %v562_v62 }
  0x67   :  { %564 = vmatprep.subr.bf16.mxu0 %v684_v0 }
  0x6a   :  { %566 = vmatpush3.bf16.msra.mxu0 %v565_v2 }
  0x6b   :  { %567 = vmatprep.subr.bf16.mxu0 %v684_v0 }
  0x6e   :  { %569 = vmatpush3.bf16.msra.mxu0 %v568_v5 }
  0x6f   :  { %570 = vmatprep.subr.bf16.mxu0 %v684_v0 }
  0x72   :  { %572 = vmatpush3.bf16.msra.mxu0 %v571_v8 }
  0x73   :  { %573 = vmatprep.subr.bf16.mxu0 %v684_v0 }
  0x76   :  { %575 = vmatpush3.bf16.msra.mxu0 %v574_v16 }
 0x12c   :  { %v152_v10 = vpop.f32.mrb[0].mxu0 }
 0x12d   :  { %v153_v11 = vadd.f32 %v347_v9, %v152_v10  ;;  %v433_v12 = vpop.f32.mrb[1].mxu0 }
 0x12f   :  { %v156_v13 = vmax.f32 %v153_v11, 0.0 }
 0x131   :  { %467 = vmatmul.mubr.f32.vlgmr.msra.gmra.mrb[0].mxu1 %v156_v13 }
 0x204   :  { %v239_v17 = vpop.f32.mrb[0].mxu1 }
 0x205   :  { %v243_v18 = vmax.f32 %v239_v17, 0.0  ;;  %v468_v19 = vpop.f32.mrb[1].mxu1 }
 0x207   :  { %502 = vmatmul.mubr.f32.vlgmr.msra.gmra.mrb[2].mxu0 %v243_v18 }
 0x2da   :  { %v326_v0 = vpop.f32.mrb[2].mxu0 }
 0x2db   :  { %330 = vst [vmem:[#allocation8] sm:$0xff] %v326_v0  ;;  %v503_v20 = vpop.f32.mrb[3].mxu0 }
 0x2dc   :  { %662 = shalt.err (!%p659_p0)
}
 0x2dd   :  { %s663_s10 = scalar_lea.hbm %s823_s5, 128 }
 0x2de   :  { %p664_p1 = scmp.ne.s32.totalorder %s823_s5, %s663_s10  ;;  %p667_p2 = scmp.lt.u32.totalorder %s663_s10, %s823_s5 }
 0x2e0   :  { %p669_p3 = pnand %p667_p2, %p664_p1 }
 0x2e2   :  { %672 = shalt.err (!%p669_p3)
}
 0x2e3   :  { %340 = dma.vmem_to_hbm [thread:$0]  %s338_s7, 128, %s823_s5, [#allocation4]  }
 0x2e4   :  { %677 = dma.done.wait [#allocation4], 128  }
 0x2e5   :  { %678 = vsyncadd [#allocation4], 4294967168 }
 0x2e6   :  { %344 = vsyncpa [#allocation3], 1 }
 0x2e7   :  { %345 = vsyncpa [#allocation6], 1 }
 0x2e8   :  { %346 = vsyncpa [#allocation4], 1 }

</bundles_post_ra>
